<compile_context>
chip_gen: v7x
topology: tpu7x:2x2x1
jax: 0.10.0
libtpu: 0.0.40
codegen_flags: <defaults>
</compile_context>

<pallas_src>
import functools

import jax
import jax.numpy as jnp
from jax.experimental import pallas as pl
from jax.experimental.pallas import tpu as pltpu


# ---------------------------------------------------------------------------
# Helpers
# ---------------------------------------------------------------------------
def _round_up(x: int, m: int) -> int:
    return ((x + m - 1) // m) * m


def _sublane_for(dtype) -> int:
    # f32 -> 8, bf16 -> 16, int8/fp8 -> 32 (rows packed per sublane group).
    return max(8, 32 // jnp.dtype(dtype).itemsize)


@functools.lru_cache(maxsize=1)
def _tpu_caps():
    """Return (tm_cap, tn_cap, tk_cap, vmem_ceiling_bytes), generation-aware."""
    try:
        vmem = int(pltpu.get_tpu_info().vmem_capacity_bytes)
    except Exception:
        vmem = 64 << 20  # conservative fallback (v7x per-TC)
    if vmem >= (96 << 20):
        # v5e / v6e: 128 MiB physical VMEM -> allow a large scoped budget.
        return 512, 512, 1024, 100 << 20
    # v7x (64 MiB per TC) or unknown: keep headroom for double-buffering.
    return 512, 512, 1024, 48 << 20


def _split_dim(size: int, cap: int, align: int):
    """Split `size` into n tiles of equal size (multiple of `align`), tile <= ~cap,
    minimizing round-up padding. Returns (tile, n_tiles, padded_size)."""
    n = max(1, -(-size // cap))                 # ceil(size / cap)
    tile = _round_up(-(-size // n), align)      # ceil(size / n) rounded to align
    return tile, n, tile * n


# ---------------------------------------------------------------------------
# Kernels
# ---------------------------------------------------------------------------
def _linear_kernel_bias(x_ref, w_ref, b_ref, o_ref, acc_ref):
    # x_ref: (tm, tk), w_ref: (tk, tn) [pre-transposed weight], b_ref: (1, tn)
    k = pl.program_id(2)

    @pl.when(k == 0)
    def _():
        acc_ref[...] = jnp.zeros_like(acc_ref)

    acc_ref[...] += jnp.dot(
        x_ref[...], w_ref[...], preferred_element_type=jnp.float32
    )

    @pl.when(k == pl.num_programs(2) - 1)
    def _():
        o_ref[...] = (acc_ref[...] + b_ref[...].astype(jnp.float32)).astype(o_ref.dtype)


def _linear_kernel_nobias(x_ref, w_ref, o_ref, acc_ref):
    k = pl.program_id(2)

    @pl.when(k == 0)
    def _():
        acc_ref[...] = jnp.zeros_like(acc_ref)

    acc_ref[...] += jnp.dot(
        x_ref[...], w_ref[...], preferred_element_type=jnp.float32
    )

    @pl.when(k == pl.num_programs(2) - 1)
    def _():
        o_ref[...] = acc_ref[...].astype(o_ref.dtype)


# ---------------------------------------------------------------------------
# One-time weight preparation (transpose + pad + optional cast) — cacheable.
# ---------------------------------------------------------------------------
def prepare_linear_weight(weight, bias=None, *, compute_dtype=None):
    """Transform PyTorch-layout weight (N, K) -> padded (K_pad, N_pad) once.

    The returned dict can be reused across many `linear_pallas` calls so the
    transpose/pad cost (an extra HBM read+write of the full weight) is paid once.
    """
    N, K = weight.shape
    cdt = jnp.dtype(compute_dtype) if compute_dtype is not None else jnp.dtype(weight.dtype)
    _, tn_cap, tk_cap, _ = _tpu_caps()

    tk, _, K_pad = _split_dim(K, tk_cap, 128)
    tn, _, N_pad = _split_dim(N, tn_cap, 128)

    wt = weight.T.astype(cdt)                       # (K, N) — contracting dim first
    if (K_pad, N_pad) != (K, N):
        wt = jnp.pad(wt, ((0, K_pad - K), (0, N_pad - N)))

    bp = None
    if bias is not None:
        bp = bias.reshape(1, N)
        if N_pad != N:
            bp = jnp.pad(bp, ((0, 0), (0, N_pad - N)))

    return dict(wt=wt, bias=bp, K=K, N=N, K_pad=K_pad, N_pad=N_pad,
                tk=tk, tn=tn, compute_dtype=cdt)


# ---------------------------------------------------------------------------
# Wrapper
# ---------------------------------------------------------------------------
def linear_pallas(x, weight=None, bias=None, *, prepared=None,
                  compute_dtype=None, tm=None):
    """Affine transform: y = x @ weight.T (+ bias).

    x:        (..., in_features)
    weight:   (out_features, in_features)  (PyTorch layout)   -- or pass `prepared`
    bias:     (out_features,) or None (ignored if `prepared` is given)
    prepared: output of prepare_linear_weight(), reused across calls
    returns   (..., out_features)
    """
    *lead, in_features = x.shape

    if prepared is None:
        assert weight is not None, "pass either `weight` or `prepared`"
        prepared = prepare_linear_weight(weight, bias, compute_dtype=compute_dtype)

    wt, bp = prepared["wt"], prepared["bias"]
    K, N = prepared["K"], prepared["N"]
    K_pad, N_pad = prepared["K_pad"], prepared["N_pad"]
    tk, tn = prepared["tk"], prepared["tn"]
    cdt = prepared["compute_dtype"]
    assert in_features == K, f"expected last dim {K}, got {in_features}"

    out_dtype = x.dtype
    x2d = x.reshape(-1, K).astype(cdt)
    M = x2d.shape[0]

    tm_cap, _, _, vmem_ceiling = _tpu_caps()
    sub = max(_sublane_for(cdt), _sublane_for(out_dtype))
    if tm is None:
        tm, n_m, M_pad = _split_dim(M, tm_cap, sub)
    else:
        tm = _round_up(int(tm), sub)
        n_m = -(-M // tm)
        M_pad = tm * n_m
    n_n = N_pad // tn
    n_k = K_pad // tk

    # Megacore / 2-TC hint: make sure there are >= 2 blocks along a parallel axis
    # when the problem allows it (otherwise half of a v7x chip sits idle).
    if n_m * n_n == 1 and N_pad >= 256 and (N_pad // 2) % 128 == 0:
        tn = N_pad // 2
        n_n = 2

    # Zero-pad the activation only when needed (K padding is correctness-neutral).
    if (M_pad, K_pad) != (M, K):
        xp = jnp.pad(x2d, ((0, M_pad - M), (0, K_pad - K)))
    else:
        xp = x2d

    grid = (n_m, n_n, n_k)

    x_it = jnp.dtype(cdt).itemsize
    w_it = jnp.dtype(wt.dtype).itemsize
    o_it = jnp.dtype(out_dtype).itemsize
    b_it = 0 if bp is None else jnp.dtype(bp.dtype).itemsize

    # Real streamed traffic: x is re-read once per N tile, w once per M tile.
    cost = pl.CostEstimate(
        flops=2 * M_pad * K_pad * N_pad,
        transcendentals=0,
        bytes_accessed=int(M_pad * K_pad * x_it * n_n
                           + K_pad * N_pad * w_it * n_m
                           + M_pad * N_pad * o_it),
    )

    # Actual per-operand double-buffered working set + f32 accumulator.
    vmem_need = (2 * (tm * tk * x_it + tk * tn * w_it)   # double-buffered inputs
                 + 2 * tn * b_it                          # bias tile (double-buffered)
                 + 2 * tm * tn * o_it                     # double-buffered output tile
                 + tm * tn * 4)                           # f32 accumulator scratch
    vmem_limit = int(min(vmem_ceiling, max(32 << 20, 2 * vmem_need)))

    x_spec = pl.BlockSpec((tm, tk), lambda i, j, k: (i, k))
    w_spec = pl.BlockSpec((tk, tn), lambda i, j, k: (k, j))
    o_spec = pl.BlockSpec((tm, tn), lambda i, j, k: (i, j))
    out_shape = jax.ShapeDtypeStruct((M_pad, N_pad), out_dtype)
    scratch = [pltpu.VMEM((tm, tn), jnp.float32)]
    cparams = pltpu.CompilerParams(
        dimension_semantics=("parallel", "parallel", "arbitrary"),
        vmem_limit_bytes=vmem_limit,
    )

    if bp is not None:
        b_spec = pl.BlockSpec((1, tn), lambda i, j, k: (0, j))
        y2d = pl.pallas_call(
            _linear_kernel_bias,
            out_shape=out_shape,
            grid_spec=pltpu.PrefetchScalarGridSpec(
                num_scalar_prefetch=0,
                grid=grid,
                in_specs=[x_spec, w_spec, b_spec],
                out_specs=o_spec,
                scratch_shapes=scratch,
            ),
            compiler_params=cparams,
            cost_estimate=cost,
        )(xp, wt, bp)
    else:
        y2d = pl.pallas_call(
            _linear_kernel_nobias,
            out_shape=out_shape,
            grid_spec=pltpu.PrefetchScalarGridSpec(
                num_scalar_prefetch=0,
                grid=grid,
                in_specs=[x_spec, w_spec],
                out_specs=o_spec,
                scratch_shapes=scratch,
            ),
            compiler_params=cparams,
            cost_estimate=cost,
        )(xp, wt)

    if (M_pad, N_pad) != (M, N):
        y2d = y2d[:M, :N]
    return y2d.reshape(*lead, N)


# ---------------------------------------------------------------------------
# Init matching the PyTorch module: U(-sf, sf), sf = 1/sqrt(in_features).
# ---------------------------------------------------------------------------
def init_linear_params(key, in_features, out_features, bias=True, dtype=jnp.float32):
    sf = 1.0 / jnp.sqrt(jnp.array(in_features, dtype=jnp.float32))
    k_w, k_b = jax.random.split(key)
    weight = sf * (2.0 * jax.random.uniform(k_w, (out_features, in_features), dtype=dtype) - 1.0)
    b = None
    if bias:
        b = sf * (2.0 * jax.random.uniform(k_b, (out_features,), dtype=dtype) - 1.0)
    return weight, b


if __name__ == "__main__":
    key = jax.random.PRNGKey(0)
    k_x, k_p = jax.random.split(key)

    in_features = 32
    out_features = 64
    batch, seq = 2, 8

    # x: (batch, seq, in_features) — arbitrary leading dims, last dim = in_features
    x = jax.random.normal(k_x, (batch, seq, in_features), dtype=jnp.float32)
    weight, bias = init_linear_params(k_p, in_features, out_features, bias=True)

    y_ref = jnp.einsum("...i,oi->...o", x, weight) + bias
    y_nb_ref = jnp.einsum("...i,oi->...o", x, weight)

    # 1) Direct call (weight prepared inline), with bias.
    y = jax.block_until_ready(linear_pallas(x, weight, bias))
    assert y.shape == (batch, seq, out_features)
    assert jnp.allclose(y, y_ref, atol=1e-5, rtol=1e-5)

    # 2) Prepared-weight path (one-time transpose/pad, reused across calls), with bias.
    prep = prepare_linear_weight(weight, bias)
    y_p = jax.block_until_ready(linear_pallas(x, prepared=prep))
    assert jnp.allclose(y_p, y_ref, atol=1e-5, rtol=1e-5)

    # 3) No-bias path.
    y_nb = jax.block_until_ready(linear_pallas(x, weight, None))
    assert jnp.allclose(y_nb, y_nb_ref, atol=1e-5, rtol=1e-5)

    # 4) Opt-in bf16 compute (inputs cast, accumulation stays f32) — loose tolerance.
    y_bf = jax.block_until_ready(linear_pallas(x, weight, bias, compute_dtype=jnp.bfloat16))
    assert y_bf.shape == (batch, seq, out_features)
    assert jnp.allclose(y_bf, y_ref, atol=5e-2, rtol=5e-2)

    print("KERNEL_OK")
</pallas_src>

<mosaic_0001>
module attributes {stable_mosaic.version = 11 : i64} {
  func.func @_linear_kernel_bias(%arg0: i32, %arg1: i32, %arg2: i32, %arg3: memref<16x128xf32, #tpu.memory_space<vmem>>, %arg4: memref<128x128xf32, #tpu.memory_space<vmem>>, %arg5: memref<1x128xf32, #tpu.memory_space<vmem>>, %arg6: memref<16x128xf32, #tpu.memory_space<vmem>>, %arg7: memref<16x128xf32, #tpu.memory_space<vmem>>) attributes {dimension_semantics = [#tpu.dimension_semantics<parallel>, #tpu.dimension_semantics<parallel>, #tpu.dimension_semantics<arbitrary>], iteration_bounds = array<i64: 1, 1, 1>, scalar_prefetch = 0 : i64, scratch_operands = 1 : i64, tpu.core_type = #tpu.core_type<tc>, window_params = [{transform_indices = @transform_0, window_bounds = array<i64: 16, 128>}, {transform_indices = @transform_1, window_bounds = array<i64: 128, 128>}, {transform_indices = @transform_2, window_bounds = array<i64: 1, 128>}, {transform_indices = @transform_3, window_bounds = array<i64: 16, 128>}]} {
    %c0_i32 = arith.constant 0 : i32
    %0 = arith.cmpi eq, %arg2, %c0_i32 : i32
    %1 = arith.extui %0 : i1 to i32
    %c0_i32_0 = arith.constant 0 : i32
    %2 = arith.cmpi ne, %1, %c0_i32_0 : i32
    scf.if %2 {
      %cst_10 = arith.constant 0.000000e+00 : f32
      %12 = vector.broadcast %cst_10 : f32 to vector<16x128xf32>
      %c0_11 = arith.constant 0 : index
      %c0_12 = arith.constant 0 : index
      %13 = vector.load %arg7[%c0_11, %c0_12] : memref<16x128xf32, #tpu.memory_space<vmem>>, vector<16x128xf32>
      tpu.vector_store %arg7[%c0_11, %c0_12], %12 {strides = array<i32>} : memref<16x128xf32, #tpu.memory_space<vmem>>, vector<16x128xf32>,
    } else {
    }
    %c0 = arith.constant 0 : index
    %c0_1 = arith.constant 0 : index
    %3 = vector.load %arg7[%c0, %c0_1] : memref<16x128xf32, #tpu.memory_space<vmem>>, vector<16x128xf32>
    %c0_2 = arith.constant 0 : index
    %c0_3 = arith.constant 0 : index
    %4 = vector.load %arg3[%c0_2, %c0_3] : memref<16x128xf32, #tpu.memory_space<vmem>>, vector<16x128xf32>
    %c0_4 = arith.constant 0 : index
    %c0_5 = arith.constant 0 : index
    %5 = vector.load %arg4[%c0_4, %c0_5] : memref<128x128xf32, #tpu.memory_space<vmem>>, vector<128x128xf32>
    %cst = arith.constant dense<0.000000e+00> : vector<16x128xf32>
    %6 = tpu.matmul %4, %5, %cst {dimension_numbers = #tpu.dot_dimension_numbers<[1], [0], [0], [1], [0, 0, 1, 1], [], []>} : vector<16x128xf32>, vector<128x128xf32>, vector<16x128xf32> -> vector<16x128xf32>
    %7 = arith.addf %3, %6 : vector<16x128xf32>
    %c0_6 = arith.constant 0 : index
    %c0_7 = arith.constant 0 : index
    %8 = vector.load %arg7[%c0_6, %c0_7] : memref<16x128xf32, #tpu.memory_space<vmem>>, vector<16x128xf32>
    tpu.vector_store %arg7[%c0_6, %c0_7], %7 {strides = array<i32>} : memref<16x128xf32, #tpu.memory_space<vmem>>, vector<16x128xf32>,
    %c0_i32_8 = arith.constant 0 : i32
    %9 = arith.cmpi eq, %arg2, %c0_i32_8 : i32
    %10 = arith.extui %9 : i1 to i32
    %c0_i32_9 = arith.constant 0 : i32
    %11 = arith.cmpi ne, %10, %c0_i32_9 : i32
    scf.if %11 {
      %c0_10 = arith.constant 0 : index
      %c0_11 = arith.constant 0 : index
      %12 = vector.load %arg7[%c0_10, %c0_11] : memref<16x128xf32, #tpu.memory_space<vmem>>, vector<16x128xf32>
      %c0_12 = arith.constant 0 : index
      %c0_13 = arith.constant 0 : index
      %13 = vector.load %arg5[%c0_12, %c0_13] : memref<1x128xf32, #tpu.memory_space<vmem>>, vector<1x128xf32>
      %14 = vector.broadcast %13 : vector<1x128xf32> to vector<16x128xf32>
      %15 = arith.addf %12, %14 : vector<16x128xf32>
      %c0_14 = arith.constant 0 : index
      %c0_15 = arith.constant 0 : index
      %16 = vector.load %arg6[%c0_14, %c0_15] : memref<16x128xf32, #tpu.memory_space<vmem>>, vector<16x128xf32>
      tpu.vector_store %arg6[%c0_14, %c0_15], %15 {strides = array<i32>} : memref<16x128xf32, #tpu.memory_space<vmem>>, vector<16x128xf32>,
    } else {
    }
    return
  }
  func.func @transform_0(%arg0: i32, %arg1: i32, %arg2: i32) -> (i32, i32) {
    %c0_i32 = arith.constant 0 : i32
    return %arg0, %arg2 : i32, i32
  }
  func.func @transform_1(%arg0: i32, %arg1: i32, %arg2: i32) -> (i32, i32) {
    %c0_i32 = arith.constant 0 : i32
    return %arg2, %arg1 : i32, i32
  }
  func.func @transform_2(%arg0: i32, %arg1: i32, %arg2: i32) -> (i32, i32) {
    %c0_i32 = arith.constant 0 : i32
    %c0_i32_0 = arith.constant 0 : i32
    return %c0_i32, %arg1 : i32, i32
  }
  func.func @transform_3(%arg0: i32, %arg1: i32, %arg2: i32) -> (i32, i32) {
    %c0_i32 = arith.constant 0 : i32
    return %arg0, %arg1 : i32, i32
  }
}

</mosaic_0001>

<bundles_post_ra>
// kernel: tpu_custom_call.1
= control target key start
LH: loop header
LB: loop body
LE: loop exit
PB: predicated region body
PF: predicated region fallthrough
CT: control target
= control target key end

     0   :  { %8 = vsyncpa [#allocation4], 0  ;;  %s418_s0 = inlined_call_operand.hbm [shape: f32[16,128], index: 0, kind: input, shape index: {}]   ;;  %s419_s1 = inlined_call_operand.hbm [shape: f32[128,128], index: 1, kind: input, shape index: {}]   ;;  %s420_s2 = inlined_call_operand.vmem [shape: f32[1,128], index: 2, kind: input, shape index: {}]   ;;  %s421_s3 = inlined_call_operand.hbm [shape: f32[16,128], index: 3, kind: output, shape index: {}]  }
   0x1   :  { %9 = vsyncpa [#allocation7], 0 }
   0x2   :  { %10 = vsyncpa [#allocation5], 0  ;;  %s345_s12 = smov [#allocation3]   ;;  %s273_s16 = scalar_lea.hbm %s418_s0, 256 }
   0x3   :  { %s16_s13 = sshll.u32 %s345_s12, 4  ;;  %p274_p0 = scmp.ne.s32.totalorder %s418_s0, %s273_s16  ;;  %s17_s13 = int_to_ptr.vmem [resolvable:$true] %s16_s13 }
   0x4   :  { %p277_p1 = scmp.lt.u32.totalorder %s273_s16, %s418_s0 }
   0x6   :  { %p279_p2 = pnand %p277_p1, %p274_p0 }
   0x8   :  { %282 = shalt.err (!%p279_p2)
}
   0x9   :  { %s283_s21 = scalar_lea.vmem %s17_s13, 256  ;;  %p288_p4 = scmp.lt.s32.totalorder %s17_s13, %s17_s13 }
   0xa   :  { %p284_p3 = scmp.ne.s32.totalorder %s17_s13, %s283_s21  ;;  %p289_p5 = scmp.lt.s32.totalorder %s283_s21, %s283_s21 }
   0xc   :  { %p290_p6 = por %p289_p5, %p288_p4 }
   0xe   :  { %p291_p7 = pnand %p290_p6, %p284_p3 }
  0x10   :  { %294 = shalt.err (!%p291_p7)
}
  0x11   :  { %s346_s22 = smov 128   ;;  %s347_s23 = smov 8  }
  0x12   :  { %22 = dma.hbm_to_vmem [thread:$0]  %s418_s0, 256, %s17_s13, [#allocation4], %s346_s22, %s346_s22, %s347_s23  }
  0x13   :  { %s348_s26 = smov [#allocation6]   ;;  %s295_s30 = scalar_lea.hbm %s419_s1, 2048 }
  0x14   :  { %s28_s27 = sshll.u32 %s348_s26, 4  ;;  %p296_p8 = scmp.ne.s32.totalorder %s419_s1, %s295_s30  ;;  %s29_s27 = int_to_ptr.vmem [resolvable:$true] %s28_s27 }
  0x15   :  { %p299_p9 = scmp.lt.u32.totalorder %s295_s30, %s419_s1 }
  0x17   :  { %p301_p10 = pnand %p299_p9, %p296_p8 }
  0x19   :  { %304 = shalt.err (!%p301_p10)
}
  0x1a   :  { %s305_s8 = scalar_lea.vmem %s29_s27, 2048  ;;  %p310_p12 = scmp.lt.s32.totalorder %s29_s27, %s29_s27 }
  0x1b   :  { %p306_p11 = scmp.ne.s32.totalorder %s29_s27, %s305_s8  ;;  %p311_p13 = scmp.lt.s32.totalorder %s305_s8, %s305_s8 }
  0x1d   :  { %p312_p0 = por %p311_p13, %p310_p12 }
  0x1f   :  { %p313_p1 = pnand %p312_p0, %p306_p11 }
  0x21   :  { %316 = shalt.err (!%p313_p1)
}
  0x22   :  { %34 = dma.hbm_to_vmem [thread:$0]  %s419_s1, 2048, %s29_s27, [#allocation7], %s346_s22, %s346_s22, %s347_s23  }
  0x23   :  { %339 = dma.done.wait [#allocation4], 256  }
  0x24   :  { %340 = vsyncadd [#allocation4], 4294967040 }
  0x25   :  { %341 = dma.done.wait [#allocation7], 2048  }
  0x26   :  { %342 = vsyncadd [#allocation7], 4294965248  ;;  %v53_v0 = vld [vmem:[#allocation6] sm:$0xff]  ;;  %v54_v1 = vld [vmem:[#allocation6 + $0x8] sm:$0xff]  ;;  %s349_s11 = smov [#allocation8]  }
  0x27   :  { %v55_v2 = vld [vmem:[#allocation6 + $0x10] sm:$0xff]  ;;  %v236_v3 = vpack.c.bf16 %v54_v1, %v53_v0  ;;  %v56_v4 = vld [vmem:[#allocation6 + $0x18] sm:$0xff]  ;;  %v57_v6 = vld [vmem:[#allocation6 + $0x20] sm:$0xff]  ;;  %s169_s12 = sshll.u32 %s349_s11, 4  ;;  %s170_s12 = int_to_ptr.vmem [resolvable:$true] %s169_s12 }
  0x28   :  { %v240_v5 = vpack.c.bf16 %v56_v4, %v55_v2  ;;  %v58_v7 = vld [vmem:[#allocation6 + $0x28] sm:$0xff]  ;;  %v51_v9 = vld [vmem:[#allocation3] sm:$0xff]  ;;  %v60_v11 = vld [vmem:[#allocation6 + $0x38] sm:$0xff]  ;;  %s317_s13 = scalar_lea.vmem %s170_s12, 256  ;;  %p322_p3 = scmp.lt.s32.totalorder %s170_s12, %s170_s12 }
  0x29   :  { %237 = vmatprep.subr.bf16.mxu0 %v236_v3  ;;  %v244_v8 = vpack.c.bf16 %v58_v7, %v57_v6  ;;  %v59_v10 = vld [vmem:[#allocation6 + $0x30] sm:$0xff]  ;;  %233 = vmatprep.mubr.f32.mxu0 %v51_v9  ;;  %v61_v13 = vld [vmem:[#allocation6 + $0x40] sm:$0xff]  ;;  %v62_v14 = vld [vmem:[#allocation6 + $0x48] sm:$0xff]  ;;  %p318_p2 = scmp.ne.s32.totalorder %s170_s12, %s317_s13  ;;  %p323_p4 = scmp.lt.s32.totalorder %s317_s13, %s317_s13 }
  0x2a   :  { %239 = vmatpush3.bf16.msra.mxu0 %v236_v3  ;;  %v248_v12 = vpack.c.bf16 %v60_v11, %v59_v10  ;;  %v252_v15 = vpack.c.bf16 %v62_v14, %v61_v13  ;;  %v63_v16 = vld [vmem:[#allocation6 + $0x50] sm:$0xff]  ;;  %v64_v17 = vld [vmem:[#allocation6 + $0x58] sm:$0xff]  ;;  %v65_v19 = vld [vmem:[#allocation6 + $0x60] sm:$0xff] }
  0x2b   :  { %241 = vmatprep.subr.bf16.mxu0 %v240_v5  ;;  %v256_v18 = vpack.c.bf16 %v64_v17, %v63_v16  ;;  %v66_v20 = vld [vmem:[#allocation6 + $0x68] sm:$0xff]  ;;  %v67_v22 = vld [vmem:[#allocation6 + $0x70] sm:$0xff]  ;;  %v68_v23 = vld [vmem:[#allocation6 + $0x78] sm:$0xff]  ;;  %p324_p5 = por %p323_p4, %p322_p3 }
  0x2c   :  { %v260_v21 = vpack.c.bf16 %v66_v20, %v65_v19  ;;  %v264_v24 = vpack.c.bf16 %v68_v23, %v67_v22  ;;  %v52_v25 = vld [vmem:[#allocation3 + $0x8] sm:$0xff]  ;;  %v182_v26 = vld [vmem:[%s420_s2] ss:$0 sm:$0xff] }
  0x2d   :  { %p325_p6 = pnand %p324_p5, %p318_p2 }
  0x2e   :  { %243 = vmatpush3.bf16.msra.mxu0 %v240_v5 }
  0x2f   :  { %245 = vmatprep.subr.bf16.mxu0 %v244_v8 }
  0x32   :  { %247 = vmatpush3.bf16.msra.mxu0 %v244_v8 }
  0x33   :  { %249 = vmatprep.subr.bf16.mxu0 %v248_v12 }
  0x36   :  { %251 = vmatpush3.bf16.msra.mxu0 %v248_v12 }
  0x37   :  { %253 = vmatprep.subr.bf16.mxu0 %v252_v15 }
  0x3a   :  { %255 = vmatpush3.bf16.msra.mxu0 %v252_v15 }
  0x3b   :  { %257 = vmatprep.subr.bf16.mxu0 %v256_v18 }
  0x3e   :  { %259 = vmatpush3.bf16.msra.mxu0 %v256_v18 }
  0x3f   :  { %261 = vmatprep.subr.bf16.mxu0 %v260_v21 }
  0x42   :  { %263 = vmatpush3.bf16.msra.mxu0 %v260_v21 }
  0x43   :  { %265 = vmatprep.subr.bf16.mxu0 %v264_v24 }
  0x46   :  { %267 = vmatpush3.bf16.msra.mxu0 %v264_v24 }
  0x49   :  { %234 = vmatmul.mubr.f32.vlgmr.msra.gmra.mrb[0].mxu0 %v52_v25 }
 0x11c   :  { %v235_v27 = vpop.f32.mrb[0].mxu0 }
 0x11d   :  { %v161_v28 = vadd.f32 %v235_v27, %v182_v26  ;;  %v135_v29 = vpop.f32.mrb[1].mxu0 }
 0x11e   :  { %v160_v30 = vadd.f32 %v182_v26, %v135_v29 }
 0x11f   :  { %163 = vst [vmem:[#allocation8 + $0x8] sm:$0xff] %v161_v28 }
 0x120   :  { %162 = vst [vmem:[#allocation8] sm:$0xff] %v160_v30 }
 0x121   :  { %328 = shalt.err (!%p325_p6)
}
 0x122   :  { %s329_s2 = scalar_lea.hbm %s421_s3, 256 }
 0x123   :  { %p330_p7 = scmp.ne.s32.totalorder %s421_s3, %s329_s2  ;;  %p333_p8 = scmp.lt.u32.totalorder %s329_s2, %s421_s3 }
 0x125   :  { %p335_p9 = pnand %p333_p8, %p330_p7 }
 0x127   :  { %338 = shalt.err (!%p335_p9)
}
 0x128   :  { %175 = dma.vmem_to_hbm [thread:$0]  %s170_s12, 256, %s421_s3, [#allocation5], %s346_s22, %s346_s22, %s347_s23  }
 0x129   :  { %343 = dma.done.wait [#allocation5], 256  }
 0x12a   :  { %344 = vsyncadd [#allocation5], 4294967040 }
 0x12b   :  { %179 = vsyncpa [#allocation4], 1 }
 0x12c   :  { %180 = vsyncpa [#allocation7], 1 }
 0x12d   :  { %181 = vsyncpa [#allocation5], 1 }

</bundles_post_ra>
